<compile_context>
chip_gen: v6e
topology: v6e:2x2x1
jax: 0.10.0
libtpu: 0.0.40
codegen_flags: <defaults>
</compile_context>

<pallas_src>
import jax
import jax.numpy as jnp
from jax.experimental import pallas as pl
from jax.experimental.pallas import tpu as pltpu


def _round_up(x, m):
    return ((x + m - 1) // m) * m


def _vmem_capacity_bytes():
    try:
        return int(pltpu.get_tpu_info().vmem_capacity_bytes)
    except Exception:
        return 128 * 2 ** 20


def _pad_vmem_bytes(rows, cols, itemsize):
    """VMEM footprint of a (rows, cols) buffer after (sublane,128) tiling."""
    sublane = 32 // itemsize
    return _round_up(max(rows, 1), sublane) * _round_up(max(cols, 1), 128) * itemsize


def _make_predictor_kernel(num_mods):
    """One token tile: fused concat + Linear(D->2) + token CE (lane-dense)."""

    def kernel(*refs):
        x_refs = refs[0:num_mods]                 # each (tile_n, D_m), native dtype
        w_refs = refs[num_mods:2 * num_mods]      # each (2, D_m) f32 (transposed)
        b_ref = refs[2 * num_mods]                # (2, 1) f32
        lab_ref = refs[2 * num_mods + 1]          # (1, tile_n) int32
        logits_ref = refs[2 * num_mods + 2]       # (2, tile_n) f32 (lane-dense)
        part_ref = refs[2 * num_mods + 3]         # (1, 2) SMEM: (loss_sum, count)

        # Fused "concat + Linear", lane-dense result:
        #   z[c, t] = sum_m sum_d w_t_m[c, d] * x_m[t, d]   (A @ B^T on the MXU)
        dn = (((1,), (1,)), ((), ()))
        z = jax.lax.dot_general(w_refs[0][...], x_refs[0][...], dn,
                                preferred_element_type=jnp.float32)
        for m in range(1, num_mods):
            z = z + jax.lax.dot_general(w_refs[m][...], x_refs[m][...], dn,
                                        preferred_element_type=jnp.float32)
        z = z + b_ref[...]                        # (2, tile_n) + (2, 1) lane bcast
        logits_ref[...] = z.astype(logits_ref.dtype)

        # Binary token CE, ignore_index = -100 (any negative label ignored),
        # single stable softplus:  loss = softplus((1 - 2*lab) * (z1 - z0)).
        lab = lab_ref[...]                        # (1, tile_n)
        valid = lab >= 0
        d = z[1:2, :] - z[0:1, :]                 # (1, tile_n)
        x = jnp.where(lab == 1, -d, d)
        # log(1 + e) form instead of log1p for Mosaic-lowering safety.
        softplus_x = jnp.maximum(x, 0.0) + jnp.log(1.0 + jnp.exp(-jnp.abs(x)))
        per_tok = jnp.where(valid, softplus_x, 0.0)

        # Merged per-tile partials; each grid step owns its own (1,2) block.
        part_ref[0, 0] = jnp.sum(per_tok)
        part_ref[0, 1] = jnp.sum(valid.astype(jnp.float32))

    return kernel


def linear_predictor_pallas(feats, labels, ws_t, b, *, tile_n=None):
    """Fused LinearPredictor forward.

    feats:  list of [N, D_m] modality slabs (native dtype, NOT concatenated,
            NOT padded -- the ragged last tile is masked in-kernel).
    labels: [N] int (ignore_index = -100).
    ws_t:   list of [2, D_m] transposed row-splits of the classifier weight.
    b:      [2] bias.
    Returns (logits [N, 2] f32, loss_sum scalar, valid_count scalar).
    """
    n = int(labels.shape[0])
    num_mods = len(feats)
    dims = [int(f.shape[1]) for f in feats]
    itemsizes = [jnp.dtype(f.dtype).itemsize for f in feats]

    # dtype-dependent sublane multiple: 8 for f32, 16 for bf16, 32 for int8/fp8.
    sublane_mult = max(32 // isz for isz in itemsizes)

    # Bytes per token row as they will actually sit in VMEM (lane dim padded
    # to 128), so the tile sizing already accounts for tiling padding.
    padded_bytes_per_row = sum(_round_up(d, 128) * isz
                               for d, isz in zip(dims, itemsizes))

    # --- generation-aware budgets: v7x has only 64 MiB VMEM per TensorCore. ---
    vmem_cap = _vmem_capacity_bytes()
    small_vmem = vmem_cap <= 80 * 2 ** 20
    per_buffer_budget = (4 if small_vmem else 8) * 2 ** 20
    vmem_cap_limit = (48 if small_vmem else 100) * 2 ** 20

    # --- tile sizing: target ~4-8 MiB of (padded) feature bytes per step. ---
    if tile_n is None:
        tile_n = per_buffer_budget // max(padded_bytes_per_row, 1)
    tile_n = max(int(tile_n), sublane_mult)
    if tile_n >= n:
        tile_n = _round_up(n, sublane_mult)       # single tile
    else:
        tile_n = max(128, (tile_n // 128) * 128)  # lane/sublane aligned tiles
    num_tiles = -(-n // tile_n)
    n_pad = num_tiles * tile_n

    # Only the (tiny) labels are padded; padded/garbage rows carry -100.
    labels_p = labels.astype(jnp.int32)
    if n_pad != n:
        labels_p = jnp.pad(labels_p, (0, n_pad - n), constant_values=-100)
    labels2d = labels_p.reshape(1, n_pad)
    b2d = jnp.asarray(b, jnp.float32).reshape(2, 1)
    ws_t = [jnp.asarray(w, jnp.float32) for w in ws_t]

    in_specs = (
        [pl.BlockSpec((tile_n, d), lambda i: (i, 0)) for d in dims]      # x_m tiles
        + [pl.BlockSpec((2, d), lambda i: (0, 0)) for d in dims]         # w_t_m (resident)
        + [pl.BlockSpec((2, 1), lambda i: (0, 0)),                       # bias
           pl.BlockSpec((1, tile_n), lambda i: (0, i))]                  # labels tile
    )
    out_specs = [
        pl.BlockSpec((2, tile_n), lambda i: (0, i)),                     # lane-dense logits
        pl.BlockSpec((1, 2), lambda i: (i, 0), memory_space=pltpu.SMEM), # (loss, count)
    ]
    out_shape = (
        jax.ShapeDtypeStruct((2, n_pad), jnp.float32),
        jax.ShapeDtypeStruct((num_tiles, 2), jnp.float32),
    )

    # --- VMEM estimate with (sublane,128) padding, x2 for double-buffering. ---
    feat_bytes = sum(2 * _pad_vmem_bytes(tile_n, d, isz)
                     for d, isz in zip(dims, itemsizes))
    w_bytes = sum(2 * _pad_vmem_bytes(2, d, 4) for d in dims)
    lab_bytes = 2 * _pad_vmem_bytes(1, tile_n, 4)
    logit_bytes = 2 * _pad_vmem_bytes(2, tile_n, 4)
    misc_bytes = 4 * 2 ** 20                     # z / CE intermediates + headroom
    vmem_limit = int(max(32 * 2 ** 20,
                         min(vmem_cap_limit,
                             feat_bytes + w_bytes + lab_bytes + logit_bytes + misc_bytes)))

    kernel = _make_predictor_kernel(num_mods)
    logits_t, partials = pl.pallas_call(
        kernel,
        out_shape=out_shape,
        grid_spec=pltpu.PrefetchScalarGridSpec(
            num_scalar_prefetch=0,
            grid=(num_tiles,),
            in_specs=in_specs,
            out_specs=out_specs,
        ),
        compiler_params=pltpu.CompilerParams(
            dimension_semantics=("parallel",),    # independent tiles (megacore-safe)
            vmem_limit_bytes=vmem_limit,
        ),
    )(*feats, *ws_t, b2d, labels2d)

    # Tiny cross-tile reduction + layout fixup (8 bytes/token) in plain JAX.
    loss_sum = jnp.sum(partials[:, 0])
    count = jnp.sum(partials[:, 1])
    logits = logits_t[:, :n].T                    # (n, 2)
    return logits, loss_sum, count


def topic_seg_predictor(labels,
                        text_features=None,
                        visual_features=None,
                        audio_features=None,
                        moe_loss=None,
                        projected_text_features=None,
                        projected_visual_features=None,
                        projected_audio_features=None,
                        *, params):
    """Forward pass of TopicSegPredictor -> (logits:[B,S,2], loss: scalar)."""
    # Prefer projected features when given (glue, plain JAX).
    feats = []
    for raw, proj in ((text_features, projected_text_features),
                      (visual_features, projected_visual_features),
                      (audio_features, projected_audio_features)):
        f = proj if proj is not None else raw
        if f is not None:
            feats.append(f)
    assert feats, "at least one modality feature must be provided"

    bsz, seq = feats[0].shape[0], feats[0].shape[1]
    n = bsz * seq
    flat_feats = [f.reshape(n, f.shape[-1]) for f in feats]
    dims = [f.shape[-1] for f in flat_feats]

    # Row-split + transpose the Linear(D -> 2) weight per modality
    # (replaces the concat; transposed for the lane-dense in-kernel matmul).
    w = params["w"]
    ws_t, off = [], 0
    for d in dims:
        ws_t.append(jnp.transpose(w[off:off + d, :]))   # (2, D_m)
        off += d
    assert off == w.shape[0], "classifier weight rows must match concat hidden dim"

    lab_flat = labels.reshape(n)
    logits_flat, loss_sum, count = linear_predictor_pallas(
        flat_feats, lab_flat, ws_t, params["b"])

    # Mean over non-ignored tokens (0 if every token is ignored).
    # TODO(synk): labels outside {-100, 0, 1} are treated as class 0 / ignore,
    # which deviates from torch CrossEntropyLoss for such (invalid) labels.
    loss = loss_sum / jnp.maximum(count, 1.0)
    if moe_loss is not None:
        loss = loss + moe_loss
    logits = logits_flat.reshape(bsz, seq, 2)
    return logits, loss


def _reference(labels, fused, w, b, moe_loss):
    """Pure-JAX reference (concat-based) for correctness checking."""
    bsz, seq, dim = fused.shape
    x = fused.reshape(bsz * seq, dim).astype(jnp.float32)
    z = x @ w.astype(jnp.float32) + b[None, :].astype(jnp.float32)
    lab = labels.reshape(-1)
    valid = lab >= 0
    lse = jax.nn.logsumexp(z, axis=-1)
    z_lab = jnp.where(lab == 1, z[:, 1], z[:, 0])
    per_tok = jnp.where(valid, lse - z_lab, 0.0)
    loss = jnp.sum(per_tok) / jnp.maximum(jnp.sum(valid.astype(jnp.float32)), 1.0)
    if moe_loss is not None:
        loss = loss + moe_loss
    return z.reshape(bsz, seq, 2), loss


if __name__ == "__main__":
    key = jax.random.PRNGKey(0)
    k_t, k_v, k_a, k_w, k_b, k_l = jax.random.split(key, 6)

    B, S = 2, 8
    Ht = Hv = Ha = 32
    D = Ht + Hv + Ha                               # 96

    text = jax.random.normal(k_t, (B, S, Ht), jnp.float32)
    visual = jax.random.normal(k_v, (B, S, Hv), jnp.float32)
    audio = jax.random.normal(k_a, (B, S, Ha), jnp.float32)

    # Deterministic classifier parameters (Linear(D -> 2)).
    params = {
        "w": (jax.random.normal(k_w, (D, 2), jnp.float32) * (1.0 / jnp.sqrt(D))),
        "b": jax.random.normal(k_b, (2,), jnp.float32) * 0.01,
    }

    labels = jax.random.randint(k_l, (B, S), 0, 2, jnp.int32)
    labels = labels.at[0, 3].set(-100)             # exercise ignore_index
    moe_loss = jnp.float32(0.01)

    logits, loss = topic_seg_predictor(
        labels,
        text_features=text,
        visual_features=visual,
        audio_features=audio,
        moe_loss=moe_loss,
        params=params,
    )
    logits = jax.block_until_ready(logits)
    loss = jax.block_until_ready(loss)

    fused = jnp.concatenate([text, visual, audio], axis=-1)
    ref_logits, ref_loss = _reference(labels, fused, params["w"], params["b"], moe_loss)
    assert jnp.allclose(logits, ref_logits, atol=1e-4, rtol=1e-4)
    assert jnp.allclose(loss, ref_loss, atol=1e-4, rtol=1e-4)

    print("KERNEL_OK")
</pallas_src>

<mosaic_0001>
module attributes {stable_mosaic.version = 11 : i64} {
  func.func @kernel(%arg0: i32, %arg1: memref<16x32xf32, #tpu.memory_space<vmem>>, %arg2: memref<16x32xf32, #tpu.memory_space<vmem>>, %arg3: memref<16x32xf32, #tpu.memory_space<vmem>>, %arg4: memref<2x32xf32, #tpu.memory_space<vmem>>, %arg5: memref<2x32xf32, #tpu.memory_space<vmem>>, %arg6: memref<2x32xf32, #tpu.memory_space<vmem>>, %arg7: memref<2x1xf32, #tpu.memory_space<vmem>>, %arg8: memref<1x16xi32, #tpu.memory_space<vmem>>, %arg9: memref<2x16xf32, #tpu.memory_space<vmem>>, %arg10: memref<1x2xf32, #tpu.memory_space<smem>>) attributes {dimension_semantics = [#tpu.dimension_semantics<parallel>], iteration_bounds = array<i64: 1>, scalar_prefetch = 0 : i64, scratch_operands = 0 : i64, tpu.core_type = #tpu.core_type<tc>, window_params = [{transform_indices = @transform_0, window_bounds = array<i64: 16, 32>}, {transform_indices = @transform_1, window_bounds = array<i64: 16, 32>}, {transform_indices = @transform_2, window_bounds = array<i64: 16, 32>}, {pipeline_mode = #tpu.pipeline_mode<synchronous>, transform_indices = @transform_3, window_bounds = array<i64: 2, 32>}, {pipeline_mode = #tpu.pipeline_mode<synchronous>, transform_indices = @transform_4, window_bounds = array<i64: 2, 32>}, {pipeline_mode = #tpu.pipeline_mode<synchronous>, transform_indices = @transform_5, window_bounds = array<i64: 2, 32>}, {pipeline_mode = #tpu.pipeline_mode<synchronous>, transform_indices = @transform_6, window_bounds = array<i64: 2, 1>}, {transform_indices = @transform_7, window_bounds = array<i64: 1, 16>}, {transform_indices = @transform_8, window_bounds = array<i64: 2, 16>}, {transform_indices = @transform_9, window_bounds = array<i64: 1, 2>}]} {
    %c0 = arith.constant 0 : index
    %c0_0 = arith.constant 0 : index
    %0 = vector.load %arg4[%c0, %c0_0] : memref<2x32xf32, #tpu.memory_space<vmem>>, vector<2x32xf32>
    %c0_1 = arith.constant 0 : index
    %c0_2 = arith.constant 0 : index
    %1 = vector.load %arg1[%c0_1, %c0_2] : memref<16x32xf32, #tpu.memory_space<vmem>>, vector<16x32xf32>
    %cst = arith.constant dense<0.000000e+00> : vector<2x16xf32>
    %2 = tpu.matmul %0, %1, %cst {dimension_numbers = #tpu.dot_dimension_numbers<[1], [1], [0], [0], [0, 0, 1, 0], [], []>} : vector<2x32xf32>, vector<16x32xf32>, vector<2x16xf32> -> vector<2x16xf32>
    %c0_3 = arith.constant 0 : index
    %c0_4 = arith.constant 0 : index
    %3 = vector.load %arg5[%c0_3, %c0_4] : memref<2x32xf32, #tpu.memory_space<vmem>>, vector<2x32xf32>
    %c0_5 = arith.constant 0 : index
    %c0_6 = arith.constant 0 : index
    %4 = vector.load %arg2[%c0_5, %c0_6] : memref<16x32xf32, #tpu.memory_space<vmem>>, vector<16x32xf32>
    %cst_7 = arith.constant dense<0.000000e+00> : vector<2x16xf32>
    %5 = tpu.matmul %3, %4, %cst_7 {dimension_numbers = #tpu.dot_dimension_numbers<[1], [1], [0], [0], [0, 0, 1, 0], [], []>} : vector<2x32xf32>, vector<16x32xf32>, vector<2x16xf32> -> vector<2x16xf32>
    %6 = arith.addf %2, %5 : vector<2x16xf32>
    %c0_8 = arith.constant 0 : index
    %c0_9 = arith.constant 0 : index
    %7 = vector.load %arg6[%c0_8, %c0_9] : memref<2x32xf32, #tpu.memory_space<vmem>>, vector<2x32xf32>
    %c0_10 = arith.constant 0 : index
    %c0_11 = arith.constant 0 : index
    %8 = vector.load %arg3[%c0_10, %c0_11] : memref<16x32xf32, #tpu.memory_space<vmem>>, vector<16x32xf32>
    %cst_12 = arith.constant dense<0.000000e+00> : vector<2x16xf32>
    %9 = tpu.matmul %7, %8, %cst_12 {dimension_numbers = #tpu.dot_dimension_numbers<[1], [1], [0], [0], [0, 0, 1, 0], [], []>} : vector<2x32xf32>, vector<16x32xf32>, vector<2x16xf32> -> vector<2x16xf32>
    %10 = arith.addf %6, %9 : vector<2x16xf32>
    %c0_13 = arith.constant 0 : index
    %c0_14 = arith.constant 0 : index
    %11 = vector.load %arg7[%c0_13, %c0_14] : memref<2x1xf32, #tpu.memory_space<vmem>>, vector<2x1xf32>
    %12 = vector.broadcast %11 : vector<2x1xf32> to vector<2x16xf32>
    %13 = arith.addf %10, %12 : vector<2x16xf32>
    %c0_15 = arith.constant 0 : index
    %c0_16 = arith.constant 0 : index
    %14 = vector.load %arg9[%c0_15, %c0_16] : memref<2x16xf32, #tpu.memory_space<vmem>>, vector<2x16xf32>
    tpu.vector_store %arg9[%c0_15, %c0_16], %13 {strides = array<i32>} : memref<2x16xf32, #tpu.memory_space<vmem>>, vector<2x16xf32>,
    %c0_17 = arith.constant 0 : index
    %c0_18 = arith.constant 0 : index
    %15 = vector.load %arg8[%c0_17, %c0_18] : memref<1x16xi32, #tpu.memory_space<vmem>>, vector<1x16xi32>
    %c0_i32 = arith.constant 0 : i32
    %16 = vector.broadcast %c0_i32 : i32 to vector<1x16xi32>
    %17 = arith.cmpi sge, %15, %16 : vector<1x16xi32>
    %18 = vector.extract_strided_slice %13 {offsets = [1, 0], sizes = [1, 16], strides = [1, 1]} : vector<2x16xf32> to vector<1x16xf32>
    %19 = vector.extract_strided_slice %13 {offsets = [0, 0], sizes = [1, 16], strides = [1, 1]} : vector<2x16xf32> to vector<1x16xf32>
    %20 = arith.subf %18, %19 : vector<1x16xf32>
    %c1_i32 = arith.constant 1 : i32
    %21 = vector.broadcast %c1_i32 : i32 to vector<1x16xi32>
    %22 = arith.cmpi eq, %15, %21 : vector<1x16xi32>
    %cst_19 = arith.constant 0.000000e+00 : f32
    %23 = vector.broadcast %cst_19 : f32 to vector<1x16xf32>
    %24 = arith.subf %23, %20 : vector<1x16xf32>
    %25 = arith.select %22, %24, %20 : vector<1x16xi1>, vector<1x16xf32>
    %cst_20 = arith.constant 0.000000e+00 : f32
    %26 = vector.broadcast %cst_20 : f32 to vector<1x16xf32>
    %27 = arith.maximumf %25, %26 : vector<1x16xf32>
    %28 = math.absf %25 : vector<1x16xf32>
    %cst_21 = arith.constant 0.000000e+00 : f32
    %29 = vector.broadcast %cst_21 : f32 to vector<1x16xf32>
    %30 = arith.subf %29, %28 : vector<1x16xf32>
    %31 = math.exp %30 : vector<1x16xf32>
    %cst_22 = arith.constant 1.000000e+00 : f32
    %32 = vector.broadcast %cst_22 : f32 to vector<1x16xf32>
    %33 = arith.addf %32, %31 : vector<1x16xf32>
    %34 = math.log %33 : vector<1x16xf32>
    %35 = arith.addf %27, %34 : vector<1x16xf32>
    %cst_23 = arith.constant 0.000000e+00 : f32
    %36 = vector.broadcast %cst_23 : f32 to vector<1x16xf32>
    %37 = arith.select %17, %35, %36 : vector<1x16xi1>, vector<1x16xf32>
    %38 = vector.shape_cast %37 : vector<1x16xf32> to vector<1x1x16xf32>
    %cst_24 = arith.constant dense<0.000000e+00> : vector<1xf32>
    %39 = vector.multi_reduction <add>, %38, %cst_24 [1, 2] : vector<1x1x16xf32> to vector<1xf32>
    %40 = vector.shape_cast %39 : vector<1xf32> to vector<1x1x1xf32>
    %41 = vector.extract %40[0, 0, 0] : f32 from vector<1x1x1xf32>
    %c0_25 = arith.constant 0 : index
    %c0_26 = arith.constant 0 : index
    %42 = memref.load %arg10[%c0_25, %c0_26] : memref<1x2xf32, #tpu.memory_space<smem>>
    memref.store %41, %arg10[%c0_25, %c0_26] : memref<1x2xf32, #tpu.memory_space<smem>>
    %43 = arith.extui %17 : vector<1x16xi1> to vector<1x16xi32>
    %44 = arith.sitofp %43 : vector<1x16xi32> to vector<1x16xf32>
    %45 = vector.shape_cast %44 : vector<1x16xf32> to vector<1x1x16xf32>
    %cst_27 = arith.constant dense<0.000000e+00> : vector<1xf32>
    %46 = vector.multi_reduction <add>, %45, %cst_27 [1, 2] : vector<1x1x16xf32> to vector<1xf32>
    %47 = vector.shape_cast %46 : vector<1xf32> to vector<1x1x1xf32>
    %48 = vector.extract %47[0, 0, 0] : f32 from vector<1x1x1xf32>
    %c0_28 = arith.constant 0 : index
    %c1 = arith.constant 1 : index
    %49 = memref.load %arg10[%c0_28, %c1] : memref<1x2xf32, #tpu.memory_space<smem>>
    memref.store %48, %arg10[%c0_28, %c1] : memref<1x2xf32, #tpu.memory_space<smem>>
    return
  }
  func.func @transform_0(%arg0: i32) -> (i32, i32) {
    %c0_i32 = arith.constant 0 : i32
    %c0_i32_0 = arith.constant 0 : i32
    return %arg0, %c0_i32 : i32, i32
  }
  func.func @transform_1(%arg0: i32) -> (i32, i32) {
    %c0_i32 = arith.constant 0 : i32
    %c0_i32_0 = arith.constant 0 : i32
    return %arg0, %c0_i32 : i32, i32
  }
  func.func @transform_2(%arg0: i32) -> (i32, i32) {
    %c0_i32 = arith.constant 0 : i32
    %c0_i32_0 = arith.constant 0 : i32
    return %arg0, %c0_i32 : i32, i32
  }
  func.func @transform_3(%arg0: i32) -> (i32, i32) {
    %c0_i32 = arith.constant 0 : i32
    %c0_i32_0 = arith.constant 0 : i32
    %c0_i32_1 = arith.constant 0 : i32
    return %c0_i32, %c0_i32_0 : i32, i32
  }
  func.func @transform_4(%arg0: i32) -> (i32, i32) {
    %c0_i32 = arith.constant 0 : i32
    %c0_i32_0 = arith.constant 0 : i32
    %c0_i32_1 = arith.constant 0 : i32
    return %c0_i32, %c0_i32_0 : i32, i32
  }
  func.func @transform_5(%arg0: i32) -> (i32, i32) {
    %c0_i32 = arith.constant 0 : i32
    %c0_i32_0 = arith.constant 0 : i32
    %c0_i32_1 = arith.constant 0 : i32
    return %c0_i32, %c0_i32_0 : i32, i32
  }
  func.func @transform_6(%arg0: i32) -> (i32, i32) {
    %c0_i32 = arith.constant 0 : i32
    %c0_i32_0 = arith.constant 0 : i32
    %c0_i32_1 = arith.constant 0 : i32
    return %c0_i32, %c0_i32_0 : i32, i32
  }
  func.func @transform_7(%arg0: i32) -> (i32, i32) {
    %c0_i32 = arith.constant 0 : i32
    %c0_i32_0 = arith.constant 0 : i32
    return %c0_i32, %arg0 : i32, i32
  }
  func.func @transform_8(%arg0: i32) -> (i32, i32) {
    %c0_i32 = arith.constant 0 : i32
    %c0_i32_0 = arith.constant 0 : i32
    return %c0_i32, %arg0 : i32, i32
  }
  func.func @transform_9(%arg0: i32) -> (i32, i32) {
    %c0_i32 = arith.constant 0 : i32
    %c0_i32_0 = arith.constant 0 : i32
    return %arg0, %c0_i32 : i32, i32
  }
}

</mosaic_0001>

<bundles_post_ra>
// kernel: tpu_custom_call.1
= control target key start
LH: loop header
LB: loop body
LE: loop exit
PB: predicated region body
PF: predicated region fallthrough
CT: control target
= control target key end

     0   :  { %15 = vsyncpa [#allocation3], 0  ;;  %s703_s0 = inlined_call_operand.hbm [shape: f32[16,32], index: 0, kind: input, shape index: {}]   ;;  %s704_s1 = inlined_call_operand.hbm [shape: f32[16,32], index: 1, kind: input, shape index: {}]   ;;  %s705_s2 = inlined_call_operand.hbm [shape: f32[16,32], index: 2, kind: input, shape index: {}]   ;;  %s706_s3 = inlined_call_operand.vmem [shape: f32[2,32], index: 3, kind: input, shape index: {}]   ;;  %s707_s4 = inlined_call_operand.vmem [shape: f32[2,32], index: 4, kind: input, shape index: {}]   ;;  %s708_s5 = inlined_call_operand.vmem [shape: f32[2,32], index: 5, kind: input, shape index: {}]   ;;  %s709_s6 = inlined_call_operand.vmem [shape: f32[2,1], index: 6, kind: input, shape index: {}]   ;;  %s710_s7 = inlined_call_operand.vmem [shape: s32[1,16], index: 7, kind: input, shape index: {}]   ;;  %s711_s8 = inlined_call_operand.hbm [shape: f32[2,16], index: 8, kind: output, shape index: {0}]   ;;  %s712_s9 = inlined_call_operand.hbm [shape: f32[1,2], index: 9, kind: output, shape index: {1}]  }
   0x1   :  { %16 = vsyncpa [#allocation7], 0 }
   0x2   :  { %17 = vsyncpa [#allocation4], 0 }
   0x3   :  { %18 = vsyncpa [#allocation5], 0  ;;  %s596_s30 = smov [#allocation6]   ;;  %s597_s11 = smov [#allocation2]  }
   0x4   :  { %s36_s10 = sshll.u32 %s596_s30, 4  ;;  %s24_s12 = sshll.u32 %s597_s11, 4  ;;  %s37_s10 = int_to_ptr.vmem [resolvable:$true] %s36_s10  ;;  %s25_s12 = int_to_ptr.vmem [resolvable:$true] %s24_s12 }
   0x5   :  { %s508_s13 = scalar_lea.vmem %s37_s10, 256  ;;  %p513_p1 = scmp.lt.s32.totalorder %s37_s10, %s37_s10 }
   0x6   :  { %p509_p0 = scmp.ne.s32.totalorder %s37_s10, %s508_s13  ;;  %p514_p2 = scmp.lt.s32.totalorder %s508_s13, %s508_s13 }
   0x8   :  { %p515_p3 = por %p514_p2, %p513_p1 }
   0xa   :  { %p516_p4 = pnand %p515_p3, %p509_p0 }
   0xc   :  { %519 = shalt.err (!%p516_p4)
}
   0xd   :  { %s598_s14 = smov 128   ;;  %s599_s15 = smov 8  }
   0xe   :  { %42 = dma.hbm_to_vmem [thread:$0]  %s704_s1, 256, %s37_s10, [#allocation7], %s598_s14, %s598_s14, %s599_s15  }
   0xf   :  { %s528_s18 = scalar_lea.vmem %s25_s12, 256  ;;  %p533_p6 = scmp.lt.s32.totalorder %s25_s12, %s25_s12 }
  0x10   :  { %p529_p5 = scmp.ne.s32.totalorder %s25_s12, %s528_s18  ;;  %p534_p7 = scmp.lt.s32.totalorder %s528_s18, %s528_s18 }
  0x12   :  { %p535_p8 = por %p534_p7, %p533_p6 }
  0x14   :  { %p536_p9 = pnand %p535_p8, %p529_p5 }
  0x16   :  { %539 = shalt.err (!%p536_p9)
}
  0x17   :  { %30 = dma.hbm_to_vmem [thread:$0]  %s703_s0, 256, %s25_s12, [#allocation3], %s598_s14, %s598_s14, %s599_s15  }
  0x18   :  { %s600_s21 = smov [#allocation8]  }
  0x19   :  { %s48_s22 = sshll.u32 %s600_s21, 4  ;;  %s49_s22 = int_to_ptr.vmem [resolvable:$true] %s48_s22 }
  0x1a   :  { %s548_s23 = scalar_lea.vmem %s49_s22, 256  ;;  %p553_p11 = scmp.lt.s32.totalorder %s49_s22, %s49_s22 }
  0x1b   :  { %p549_p10 = scmp.ne.s32.totalorder %s49_s22, %s548_s23  ;;  %p554_p12 = scmp.lt.s32.totalorder %s548_s23, %s548_s23 }
  0x1d   :  { %p555_p13 = por %p554_p12, %p553_p11 }
  0x1f   :  { %p556_p0 = pnand %p555_p13, %p549_p10 }
  0x21   :  { %559 = shalt.err (!%p556_p0)
}
  0x22   :  { %54 = dma.hbm_to_vmem [thread:$0]  %s705_s2, 256, %s49_s22, [#allocation7], %s598_s14, %s598_s14, %s599_s15  }
  0x23   :  { %588 = dma.done.wait [#allocation3], 256  }
  0x24   :  { %589 = vsyncadd [#allocation3], 4294967040 }
  0x25   :  { %590 = dma.done.wait [#allocation7], 512  }
  0x26   :  { %591 = vsyncadd [#allocation7], 4294966784  ;;  %v601_v0 = vmov 0.0   ;;  %vm602_vm0 = vmmov 0   ;;  %v603_v1 = vmov 0   ;;  %vm80_vm1 = vcmask 261120  }
  0x27   :  { %459 = vmatprep.subr.mxu0 %v601_v0  ;;  %466 = vmatprep.subr.mxu1 %v601_v0  ;;  %v79_v2 = vld [vmem:[#allocation6 + $0x8] sm:$0xff]  ;;  %v76_v3 = vld [vmem:[#allocation2 + $0x8] sm:$0xff]  ;;  %v78_v4 = vld [vmem:[#allocation6] sm:$0xff]  ;;  %vm384_vm2 = vcmask 122880   ;;  %v604_v19 = vmov 1966171168   ;;  %v343_v21 = vlaneseq }
  0x28   :  { %463 = vmatprep.mubr.msk.f32.mxu0 %vm602_vm0, %v601_v0  ;;  %470 = vmatprep.mubr.msk.f32.mxu1 %vm602_vm0, %v601_v0  ;;  %v75_v5 = vld [vmem:[#allocation2] sm:$0xff]  ;;  %v241_v9 = vld [vmem:[#allocation8 + $0x8] sm:$0xff]  ;;  %v341_v20 = vunpack.c.l.s4 %v604_v19  ;;  %vm329_vm4 = vcmask 123904  }
  0x29   :  { %495 = vset.pattern.permute.xlu0 %v603_v1  ;;  %460 = vmatpush3.xpose.msk.msra.mxu0 %vm80_vm1, %v79_v2  ;;  %v322_v6 = vld [vmem:[%s709_s6] sm:$0x3]  ;;  %v344_v27 = vshrl.u32 %v343_v21, 7 }
  0x2a   :  { %467 = vmatpush3.xpose.msk.msra.mxu1 %vm80_vm1, %v76_v3  ;;  %461 = vmatprep.subr.mxu0 %v601_v0  ;;  %v77_v7 = vld [vmem:[%s707_s4] sm:$0x3]  ;;  %v342_v26 = vunpack.c.0.s8 %v341_v20 }
  0x2b   :  { %468 = vmatprep.subr.mxu1 %v601_v0  ;;  %325 = vperm.xlu0 %495, %v322_v6   ;;  %v74_v8 = vld [vmem:[%s706_s3] sm:$0x3] }
  0x2c   :  { %v240_v10 = vld [vmem:[#allocation8] sm:$0xff]  ;;  %v345_v30 = vsub.s32 %v342_v26, %v344_v27 }
  0x2d   :  { %462 = vmatpush3.xpose.msk.msra.mxu0 %vm80_vm1, %v78_v4  ;;  %v239_v11 = vld [vmem:[%s708_s5] sm:$0x3]  ;;  %s605_s5 = smov [#allocation9]  }
  0x2e   :  { %469 = vmatpush3.xpose.msk.msra.mxu1 %vm80_vm1, %v75_v5  ;;  %473 = vmatprep.subr.mxu0 %v601_v0  ;;  %v331_v12 = vld [vmem:[%s710_s7] sm:$0x1]  ;;  %s417_s7 = sshll.u32 %s605_s5, 4  ;;  %s418_s7 = int_to_ptr.vmem [resolvable:$true] %s417_s7 }
  0x2f   :  { %vm332_vm3 = vcmp.ge.s32.totalorder %v331_v12, 0  ;;  %vm337_vm5 = vcmp.eq.s32.totalorder %v331_v12, 1  ;;  %s560_s30 = scalar_lea.vmem %s418_s7, 32  ;;  %p565_p2 = scmp.lt.s32.totalorder %s418_s7, %s418_s7 }
  0x30   :  { %464 = vmatmul.mubr.msk.f32.vlgmr.msra.gmra.mxu0 %vm80_vm1, %v77_v7  ;;  %v449_v13 = vsel %vm332_vm3, 1.0, %v601_v0  ;;  %p561_p1 = scmp.ne.s32.totalorder %s418_s7, %s560_s30  ;;  %p566_p3 = scmp.lt.s32.totalorder %s560_s30, %s560_s30 }
  0x31   :  { %471 = vmatmul.mubr.msk.f32.vlgmr.msra.gmra.mxu1 %vm80_vm1, %v74_v8  ;;  %474 = vmatpush3.xpose.msk.msra.mxu0 %vm80_vm1, %v241_v9  ;;  %v399_v14 = vsel %vm384_vm2, %v449_v13, 0.0 }
  0x32   :  { %477 = vmatprep.mubr.msk.f32.mxu0 %vm602_vm0, %v601_v0  ;;  %475 = vmatprep.subr.mxu0 %v601_v0  ;;  %p567_p4 = por %p566_p3, %p565_p2 }
  0x33   :  { %400 = vadd.xlane.f32.xlu1 %v399_v14 }
  0x34   :  { %p568_p5 = pnand %p567_p4, %p561_p1 }
  0x35   :  { %476 = vmatpush3.xpose.msk.msra.mxu0 %vm80_vm1, %v240_v10 }
  0x38   :  { %478 = vmatmul.mubr.msk.f32.vlgmr.msra.gmra.mxu0 %vm80_vm1, %v239_v11 }
  0xa6   :  { %v326_v24 = vpop.permute.xlu0 %325 }
  0xf0   :  { %v156_v15 = vpop.f32.mrf.mxu0 }
  0xf1   :  { %v235_v16 = vpop.f32.mrf.mxu1 }
  0xf2   :  { %v465_v17 = vpop.f32.mrf.mxu0  ;;  %v236_v22 = vadd.f32 %v235_v16, %v156_v15 }
  0xf3   :  { %v472_v18 = vpop.f32.mrf.mxu1 }
  0xf8   :  { %v317_v23 = vpop.f32.mrf.mxu0 }
  0xf9   :  { %v321_v25 = vadd.f32 %v317_v23, %v236_v22 }
  0xfa   :  { %v479_v28 = vpop.f32.mrf.mxu0 }
  0xfb   :  { %v328_v29 = vadd.f32 %v326_v24, %v321_v25 }
  0xfd   :  { %v334_v31 = vrot.slane %v328_v29, 7  ;;  %330 = vst.msk [vmem:[#allocation9] sm:$0x3] %vm329_vm4, %v328_v29 }
  0xff   :  { %v336_v32 = vsub.f32 %v328_v29, %v334_v31 }
 0x101   :  { %v338_v33 = vsub.f32 0.0, %v336_v32  ;;  %v363_v34 = vrot.slane %v336_v32, %v345_v30 }
 0x103   :  { %v346_v35 = vrot.slane %v338_v33, %v345_v30  ;;  %v364_v36 = vcombine.high %v363_v34, %v363_v34 }
 0x105   :  { %v347_v37 = vcombine.high %v346_v35, %v346_v35  ;;  %v371_v38 = vrot.slane %v364_v36, %v345_v30 }
 0x107   :  { %v354_v39 = vrot.slane %v347_v37, %v345_v30 }
 0x109   :  { %v373_v40 = vsel %vm337_vm5, %v354_v39, %v371_v38 }
 0x10a   :  { %v375_v41 = vand.u32 2147483647, %v373_v40  ;;  %v374_v47 = vmax.f32 %v373_v40, 0.0 }
 0x10c   :  { %v376_v42 = vsub.f32 0.0, %v375_v41 }
 0x10e   :  { %v377_v43 = vmul.f32 1.442695, %v376_v42 }
 0x110   :  { %496 = vpow2.f32 %v377_v43 }
 0x11d   :  { %v497_v44 = vpop.eup %496 }
 0x11e   :  { %v379_v45 = vadd.f32 1.0, %v497_v44 }
 0x120   :  { %498 = vlog2.f32 %v379_v45 }
 0x12d   :  { %v499_v46 = vpop.eup %498 }
 0x12e   :  { %v381_v48 = vmul.f32 0.6931472, %v499_v46 }
 0x130   :  { %v382_v49 = vadd.f32 %v381_v48, %v374_v47 }
 0x132   :  { %v383_v50 = vsel %vm332_vm3, %v382_v49, 0.0 }
 0x133   :  { %v385_v51 = vsel %vm384_vm2, %v383_v50, 0.0 }
 0x134   :  { %386 = vadd.xlane.f32.xlu0 %v385_v51 }
 0x135   :  { %571 = shalt.err (!%p568_p5)
}
 0x136   :  { %420 = dma.vmem_to_hbm [thread:$0]  %s418_s7, 32, %s711_s8, [#allocation4]   ;;  %v401_v52 = vpop.xlane.xlu1 %400 }
 0x137   :  { %v402_v53 = vrot.slane %v401_v52, 4  ;;  %s606_s8 = smov [#allocation10]  }
 0x139   :  { %v403_v54 = vadd.f32 %v402_v53, %v401_v52 }
 0x13b   :  { %v404_v55 = vrot.slane %v403_v54, 2 }
 0x13d   :  { %v405_v59 = vadd.f32 %v404_v55, %v403_v54 }
 0x13f   :  { %v406_v62 = vrot.slane %v405_v59, 1 }
 0x141   :  { %v407_v1 = vadd.f32 %v406_v62, %v405_v59 }
 0x1bd   :  { %v387_v56 = vpop.xlane.xlu0 %386 }
 0x1be   :  { %v388_v57 = vrot.slane %v387_v56, 4 }
 0x1c0   :  { %v389_v58 = vadd.f32 %v388_v57, %v387_v56 }
 0x1c2   :  { %v390_v60 = vrot.slane %v389_v58, 2 }
 0x1c4   :  { %v391_v61 = vadd.f32 %v390_v60, %v389_v58 }
 0x1c6   :  { %v392_v63 = vrot.slane %v391_v61, 1 }
 0x1c8   :  { %v393_v0 = vadd.f32 %v392_v63, %v391_v61 }
 0x1ca   :  { %480 = vpush %v393_v0 }
 0x1cb   :  { %482 = vpush %v407_v1 }
 0x1fb   :  { %s481_s12 = spop %480 }
 0x1fc   :  { %396 = sst [smem:[#allocation10]] %s481_s12  ;;  %s483_s13 = spop %482 }
 0x1fd   :  { %410 = sst [smem:[#allocation10 + $0x1]] %s483_s13 }
 0x1fe   :  { %428 = dma.smem_to_hbm %s606_s8, 16, %s712_s9, [#allocation5]  }
 0x1ff   :  { %592 = dma.done.wait [#allocation4], 32  }
 0x200   :  { %593 = vsyncadd [#allocation4], 4294967264 }
 0x201   :  { %594 = dma.done.wait [#allocation5], 16  }
 0x202   :  { %595 = vsyncadd [#allocation5], 4294967280 }
 0x203   :  { %435 = sfence }
 0x204   :  { %436 = vsyncpa [#allocation3], 1 }
 0x205   :  { %437 = vsyncpa [#allocation7], 1 }
 0x206   :  { %438 = vsyncpa [#allocation4], 1 }
 0x207   :  { %439 = vsyncpa [#allocation5], 1 }

</bundles_post_ra>
